<compile_context>
chip_gen: v6e
topology: v6e:2x2x1
jax: 0.10.0
libtpu: 0.0.40
codegen_flags: <defaults>
</compile_context>

<pallas_src>
import jax
import jax.numpy as jnp
from jax.experimental import pallas as pl
from jax.experimental.pallas import tpu as pltpu


# ---------------------------------------------------------------------------
# helpers
# ---------------------------------------------------------------------------
def _round_up(x, m):
    return (x + m - 1) // m * m


def _pad_axis(a, axis, to):
    pad = to - a.shape[axis]
    if pad == 0:
        return a
    widths = [(0, 0)] * a.ndim
    widths[axis] = (0, pad)
    return jnp.pad(a, widths)


def _patchify_nchw(x, patch):
    """NCHW -> (N*Hf*Wf, patch*patch*C) rows; K order = (patch_row, patch_col, c).

    One XLA transpose (the bf16 cast fuses into it); the reshapes are free.
    # TODO(synk): fold this patchify fully into the kernel's input DMA
    # (BlockSpec over raw NHWC row-slabs) instead of relying on XLA fusion;
    # verify with an HLO dump that allow_input_fusion actually folds it.
    """
    N, C, H, W = x.shape
    Hf, Wf = H // patch, W // patch
    xp = x.reshape(N, C, Hf, patch, Wf, patch)
    xp = jnp.transpose(xp, (0, 2, 4, 3, 5, 1))            # (N, Hf, Wf, pr, pc, C)
    return xp.reshape(N * Hf * Wf, patch * patch * C)


def _choose_tm(M, tm_target=4096):
    """Pick the M tile: big enough to amortize per-step overhead, but keep
    >=2 grid steps when M allows it so v7x's two TensorCores both run."""
    TM = min(tm_target, _round_up(M, 16))                 # 16-row (bf16 sublane) align
    if _round_up(M, TM) // TM < 2 and M > 16:
        TM = _round_up((M + 1) // 2, 16)                  # split into >=2 steps
    return TM


# ---------------------------------------------------------------------------
# Kernel: patch-embed matmul, tiled over M (synthetic backbone body)
# ---------------------------------------------------------------------------
def _patch_embed_kernel(x_ref, w_ref, b_ref, o_ref):
    # bf16 x bf16 -> f32 accumulation on the MXU; f32 bias epilogue; bf16 store.
    acc = jnp.dot(x_ref[...], w_ref[...], preferred_element_type=jnp.float32)
    o_ref[...] = (acc + b_ref[...]).astype(o_ref.dtype)


def patch_embed_matmul(x_patches_bf16, w_bf16, b_f32, *, tm_target=4096):
    """(M, K) bf16 @ (K, Cout_pad) bf16 + (1, Cout_pad) f32 -> (M, Cout_pad) bf16.

    HBM-bound at K~48-64 / Cout_pad=128 on all generations; bytes moved is the
    only lever, so: bf16 output, large M tiles, lane-dense 128-padded Cout.
    """
    M, K = x_patches_bf16.shape
    Kw, cout_pad = w_bf16.shape
    assert K == Kw and cout_pad % 128 == 0, "Cout must be padded to 128 lanes"

    TM = _choose_tm(M, tm_target)
    M_pad = _round_up(M, TM)
    if M_pad != M:
        x_patches_bf16 = _pad_axis(x_patches_bf16, 0, M_pad)

    # VMEM budget (double-buffered): 2*(TM*K*2 + TM*cout_pad*2) + K*cout_pad*2
    # ~ 3 MiB at TM=4096, K=64, Cout_pad=128 -> fits v5e/v6e/v7x scoped defaults,
    # no vmem_limit_bytes needed on any generation (incl. v7x's 64 MiB VMEM).
    out = pl.pallas_call(
        _patch_embed_kernel,
        out_shape=jax.ShapeDtypeStruct((M_pad, cout_pad), jnp.bfloat16),
        grid=(M_pad // TM,),
        in_specs=[
            pl.BlockSpec((TM, K), lambda i: (i, 0)),          # streamed over M
            pl.BlockSpec((K, cout_pad), lambda i: (0, 0)),    # VMEM-resident weight
            pl.BlockSpec((1, cout_pad), lambda i: (0, 0)),    # VMEM-resident bias
        ],
        out_specs=pl.BlockSpec((TM, cout_pad), lambda i: (i, 0)),
        compiler_params=pltpu.CompilerParams(
            dimension_semantics=("parallel",),                # megacore-splittable
            allow_input_fusion=[True, False, False],          # let XLA fuse patchify/cast
        ),
    )(x_patches_bf16, w_bf16, b_f32)

    if M_pad != M:
        # TODO(synk): verify in HLO that this row slice fuses into the consumer
        # reshape; otherwise carry the padded M downstream.
        out = out[:M]
    return out


# ---------------------------------------------------------------------------
# BackboneBase.forward equivalent
# ---------------------------------------------------------------------------
def backbone_base_forward(tensors, mask, params, patch=4):
    """tensors: [N, C, H, W] float32 (NCHW, like PyTorch); mask: [N, H, W] bool.

    Returns {"0": (features_NHWC_bf16, mask_small)} -- features are
    channels-last (same values as the PyTorch NCHW map, only layout/dtype
    differ; the feature map is consumed in bf16 downstream).
    """
    N, C, H, W = tensors.shape
    Hf, Wf = H // patch, W // patch
    w, b = params["w"], params["b"]                       # (P*P*C, Cout), (1, Cout)
    cout = w.shape[1]
    cout_pad = _round_up(cout, 128)

    # ---- body: synthetic patch-embed backbone --------------------------------
    x_patches = _patchify_nchw(tensors, patch).astype(jnp.bfloat16)
    w_p = _pad_axis(w, 1, cout_pad).astype(jnp.bfloat16)  # lane-dense weights
    b_p = _pad_axis(b, 1, cout_pad).astype(jnp.float32)
    feat = patch_embed_matmul(x_patches, w_p, b_p)        # (M, cout_pad) bf16

    if cout_pad != cout:
        # TODO(synk): prefer carrying the 128-padded channel dim downstream
        # (e.g. Swin embed dim 96) instead of materializing this slice.
        feat = feat[:, :cout]
    feat = feat.reshape(N, Hf, Wf, cout)                  # NHWC, no extra transpose

    # ---- mask: F.interpolate(m.float(), size=(Hf,Wf), mode='nearest').bool() --
    # PyTorch nearest: src = floor(dst * in / out).  Pure indexing -> XLA
    # gather (== strided slice for exact integer ratios); no kernel needed.
    src_h = (jnp.arange(Hf) * H) // Hf
    src_w = (jnp.arange(Wf) * W) // Wf
    mask_small = mask[:, src_h[:, None], src_w[None, :]]  # (N, Hf, Wf) bool

    return {"0": (feat, mask_small)}                      # NestedTensor(x, mask)


def init_params(key, in_ch, num_channels, patch):
    k_w, k_b = jax.random.split(key)
    K = patch * patch * in_ch
    w = jax.random.normal(k_w, (K, num_channels), jnp.float32) * 0.02
    b = jax.random.normal(k_b, (1, num_channels), jnp.float32) * 0.1
    return {"w": w, "b": b}


if __name__ == "__main__":
    key = jax.random.PRNGKey(0)
    N, C, H, W = 2, 4, 16, 16
    patch = 4
    num_channels = 128                                    # lane-dense Cout

    k_x, k_p = jax.random.split(key)
    x = jax.random.normal(k_x, (N, C, H, W), jnp.float32)

    hh = jnp.arange(H)[:, None]
    ww = jnp.arange(W)[None, :]
    mask = ((hh + ww + jnp.arange(N)[:, None, None]) % 3) == 0   # deterministic bool mask

    params = init_params(k_p, C, num_channels, patch)

    out = backbone_base_forward(x, mask, params, patch=patch)
    feat, mask_small = out["0"]
    jax.block_until_ready(feat)
    jax.block_until_ready(mask_small)

    # reference: same bf16-rounded operands, f32 accumulation, bf16 output
    xp = _patchify_nchw(x, patch).astype(jnp.bfloat16).astype(jnp.float32)
    wr = params["w"].astype(jnp.bfloat16).astype(jnp.float32)
    ref = (xp @ wr + params["b"]).reshape(N, H // patch, W // patch, num_channels)

    assert feat.shape == (N, H // patch, W // patch, num_channels)
    assert feat.dtype == jnp.bfloat16
    assert bool(jnp.allclose(feat.astype(jnp.float32), ref, rtol=2e-2, atol=2e-2))
    assert mask_small.shape == (N, H // patch, W // patch)
    # exact integer ratio -> nearest == strided slicing
    assert bool(jnp.all(mask_small == mask[:, ::patch, ::patch]))

    print("KERNEL_OK")
</pallas_src>

<mosaic_0001>
module attributes {stable_mosaic.version = 11 : i64} {
  func.func @_patch_embed_kernel(%arg0: i32, %arg1: memref<16x64xbf16, #tpu.memory_space<vmem>>, %arg2: memref<64x128xbf16, #tpu.memory_space<vmem>>, %arg3: memref<1x128xf32, #tpu.memory_space<vmem>>, %arg4: memref<16x128xbf16, #tpu.memory_space<vmem>>) attributes {dimension_semantics = [#tpu.dimension_semantics<parallel>], iteration_bounds = array<i64: 2>, scalar_prefetch = 0 : i64, scratch_operands = 0 : i64, tpu.core_type = #tpu.core_type<tc>, window_params = [{transform_indices = @transform_0, window_bounds = array<i64: 16, 64>}, {pipeline_mode = #tpu.pipeline_mode<synchronous>, transform_indices = @transform_1, window_bounds = array<i64: 64, 128>}, {pipeline_mode = #tpu.pipeline_mode<synchronous>, transform_indices = @transform_2, window_bounds = array<i64: 1, 128>}, {transform_indices = @transform_3, window_bounds = array<i64: 16, 128>}]} {
    %c0 = arith.constant 0 : index
    %c0_0 = arith.constant 0 : index
    %0 = vector.load %arg1[%c0, %c0_0] : memref<16x64xbf16, #tpu.memory_space<vmem>>, vector<16x64xbf16>
    %c0_1 = arith.constant 0 : index
    %c0_2 = arith.constant 0 : index
    %1 = vector.load %arg2[%c0_1, %c0_2] : memref<64x128xbf16, #tpu.memory_space<vmem>>, vector<64x128xbf16>
    %cst = arith.constant dense<0.000000e+00> : vector<16x128xf32>
    %2 = tpu.matmul %0, %1, %cst {dimension_numbers = #tpu.dot_dimension_numbers<[1], [0], [0], [1], [0, 0, 1, 1], [], []>} : vector<16x64xbf16>, vector<64x128xbf16>, vector<16x128xf32> -> vector<16x128xf32>
    %c0_3 = arith.constant 0 : index
    %c0_4 = arith.constant 0 : index
    %3 = vector.load %arg3[%c0_3, %c0_4] : memref<1x128xf32, #tpu.memory_space<vmem>>, vector<1x128xf32>
    %4 = vector.broadcast %3 : vector<1x128xf32> to vector<16x128xf32>
    %5 = arith.addf %2, %4 : vector<16x128xf32>
    %6 = arith.truncf %5 : vector<16x128xf32> to vector<16x128xbf16>
    %c0_5 = arith.constant 0 : index
    %c0_6 = arith.constant 0 : index
    %7 = vector.load %arg4[%c0_5, %c0_6] : memref<16x128xbf16, #tpu.memory_space<vmem>>, vector<16x128xbf16>
    tpu.vector_store %arg4[%c0_5, %c0_6], %6 {strides = array<i32>} : memref<16x128xbf16, #tpu.memory_space<vmem>>, vector<16x128xbf16>,
    return
  }
  func.func @transform_0(%arg0: i32) -> (i32, i32) {
    %c0_i32 = arith.constant 0 : i32
    %c0_i32_0 = arith.constant 0 : i32
    return %arg0, %c0_i32 : i32, i32
  }
  func.func @transform_1(%arg0: i32) -> (i32, i32) {
    %c0_i32 = arith.constant 0 : i32
    %c0_i32_0 = arith.constant 0 : i32
    %c0_i32_1 = arith.constant 0 : i32
    return %c0_i32, %c0_i32_0 : i32, i32
  }
  func.func @transform_2(%arg0: i32) -> (i32, i32) {
    %c0_i32 = arith.constant 0 : i32
    %c0_i32_0 = arith.constant 0 : i32
    %c0_i32_1 = arith.constant 0 : i32
    return %c0_i32, %c0_i32_0 : i32, i32
  }
  func.func @transform_3(%arg0: i32) -> (i32, i32) {
    %c0_i32 = arith.constant 0 : i32
    %c0_i32_0 = arith.constant 0 : i32
    return %arg0, %c0_i32 : i32, i32
  }
}

</mosaic_0001>

<bundles_post_ra>
// kernel: tpu_custom_call.1
= control target key start
LH: loop header
LB: loop body
LE: loop exit
PB: predicated region body
PF: predicated region fallthrough
CT: control target
= control target key end

     0   :  { %8 = vsyncpa [#allocation3], 0  ;;  %s863_s0 = inlined_call_operand.hbm [shape: bf16[32,64], index: 0, kind: input, shape index: {}]   ;;  %s864_s1 = inlined_call_operand.hbm [shape: bf16[64,128], index: 1, kind: input, shape index: {}]   ;;  %s865_s2 = inlined_call_operand.vmem [shape: f32[1,128], index: 2, kind: input, shape index: {}]   ;;  %s866_s3 = inlined_call_operand.hbm [shape: bf16[32,128], index: 3, kind: output, shape index: {}]  }
   0x1   :  { %10 = vsyncpa [#allocation3 + $0x1], 0 }
   0x2   :  { %11 = vsyncpa [#allocation6], 0 }
   0x3   :  { %12 = vsyncpa [#allocation4], 0 }
   0x4   :  { %14 = vsyncpa [#allocation4 + $0x1], 0  ;;  %s677_s12 = smov 0   ;;  %s679_s13 = smov 0  }
   0x5   :  { %s681_s14 = smov 0   ;;  %s683_s15 = smov 0  }
   0x6 LB: > { %s698_s16 = sadd.s32 4294967295, %s646_s15   ;;  %s405_s17 = sadd.s32 4294967294, %s646_s15   ;;  %s646_s15 = sphi %s683_s15, %s888_s15   ;;  %s642_s14 = sphi %s681_s14, %s887_s14   ;;  %s638_s13 = sphi %s679_s13, %s886_s13   ;;  %s634_s12 = sphi %s677_s12, %s885_s12  }
   0x7   : > { %p40_p0 = scmp.ne.s32.totalorder %s638_s13, %s634_s12  ;;  %p867_p1 = scmp.eq.s32.totalorder %s698_s16, 0 }
   0x8   : > { %p112_p3 = scmp.eq.s32.totalorder %s405_s17, 1  ;;  %p406_p5 = scmp.ge.s32.totalorder %s646_s15, 1 }
   0x9   : > { %p707_p4 = por %p867_p1, %p40_p0  ;;  %p119_p7 = scmp.lt.s32.totalorder %s646_s15, 3 }
   0xa   : > { %p712_p6 = por %p112_p3, %p40_p0  ;;  %s648_s21 = smov [#allocation5]  }
   0xb   : > { %s871_s18 = scalar_select %p707_p4, 1, 0 }
   0xc   : > { %s872_s19 = scalar_select %p712_p6, 1, 0 }
   0xd   : > { %p717_p8 = pnand %p406_p5, %p119_p7  ;;  %s131_s22 = sshll.u32 %s648_s21, 4  ;;  %s132_s22 = int_to_ptr.vmem [resolvable:$true] %s131_s22 }
   0xe   : > { %s731_s24 = sadd.s32 1, %s646_s15   ;;  %s27_s25 = sadd.s32 1, %s642_s14 }
   0xf   : > { %s873_s20 = scalar_select %p717_p8, 1, 0 }
  0x10   : > { %p464_p9 = pneg %p717_p8  ;;  %s24_s26 = ssub.s32 %s646_s15, %s731_s24 }
  0x11   : > { %s535_s27 = scalar_lea.vmem %s132_s22, 512  ;;  %p543_p5 = scmp.lt.s32.totalorder %s132_s22, %s132_s22 }
  0x12   : > { %p726_p11 = pnand %p464_p9, %p867_p1  ;;  %p536_p13 = scmp.ne.s32.totalorder %s132_s22, %s535_s27 }
  0x13   : > { %p544_p7 = scmp.lt.s32.totalorder %s535_s27, %s535_s27 }
  0x14   : > { %p526_p12 = pneg %p726_p11 }
  0x15   : > { %p545_p10 = por %p544_p7, %p543_p5 }
  0x16   : > { %p538_p0 = pnand %p536_p13, %p526_p12 }
  0x18   : > { %p539_p3 = pneg %p538_p0 }
  0x1a   : > { %p546_p2 = pnand %p545_p10, %p539_p3 }
  0x1c   : > { %549 = shalt.err (!%p546_p2)
}
  0x1d   : > { %s649_s28 = smov 64   ;;  %s650_s29 = smov 4  }
  0x1e   : > { %467 = dma.hbm_to_vmem [thread:$0]  (!%p726_p11), %s864_s1, 512, %s132_s22, [#allocation6], %s649_s28, %s649_s28, %s650_s29  }
  0x1f   : > { %p25_p2 = scmp.eq.s32.totalorder %s24_s26, 0  ;;  %p34_p9 = scmp.ne.s32.totalorder %s642_s14, %s638_s13 }
  0x20   : > { %p35_p10 = scmp.eq.s32.totalorder %s646_s15, 0  ;;  %p477_p12 = scmp.lt.s32.totalorder %s646_s15, 2 }
  0x21   : > { %s751_s5 = scalar_select %p25_p2, %s642_s14, %s27_s25  }
  0x22   : > { %p36_p13 = por %p35_p10, %p34_p9  ;;  %p875_p0 = scmp.eq.s32.totalorder %s698_s16, 1 }
  0x23   : > { %s148_s7 = sand.u32 1, %s642_s14   ;;  %s430_s8 = sshll.u32 %s646_s15, 7 }
  0x24   : > { %p755_p3 = por %p875_p0, %p34_p9  ;;  %s409_s9 = sshll.u32 %s148_s7, 3 }
  0x25   : > { %s764_s17 = scalar_lea.hbm %s863_s0, %s430_s8  ;;  %s152_s21 = scalar_lea.vmem [#allocation2], %s409_s9 }
  0x26   : > { %s876_s6 = scalar_select %p755_p3, 1, 0 }
  0x27   : > { %s159_s22 = sshll.u32 %s152_s21, 4  ;;  %p766_p11 = pnand %p477_p12, %p36_p13  ;;  %s770_s22 = int_to_ptr.vmem [resolvable:$true] %s159_s22 }
  0x28   : > { %s772_s25 = scalar_lea.sflag [#allocation3], %s148_s7  ;;  %s550_s26 = scalar_lea.hbm %s764_s17, 128 }
  0x29   : > { %p551_p5 = scmp.ne.s32.totalorder %s764_s17, %s550_s26  ;;  %p552_p7 = pneg %p766_p11 }
  0x2a   : > { %s555_s4 = scalar_lea.hbm %s863_s0, 256  ;;  %p556_p10 = scmp.lt.s32.totalorder %s764_s17, %s863_s0 }
  0x2b   : > { %p553_p2 = pnand %p552_p7, %p551_p5  ;;  %p557_p12 = scmp.lt.s32.totalorder %s555_s4, %s550_s26 }
  0x2d   : > { %p554_p9 = pneg %p553_p2  ;;  %p558_p13 = por %p557_p12, %p556_p10 }
  0x2f   : > { %p559_p0 = pnand %p558_p13, %p554_p9 }
  0x31   : > { %562 = shalt.err (!%p559_p0)
}
  0x32   : > { %s563_s7 = scalar_lea.vmem %s770_s22, 128  ;;  %s651_s10 = smov [#allocation2]  }
  0x33   : > { %p564_p1 = scmp.ne.s32.totalorder %s770_s22, %s563_s7  ;;  %s568_s11 = sshll.u32 %s651_s10, 4  ;;  %s569_s11 = int_to_ptr.vmem [resolvable:$false] %s568_s11 }
  0x34   : > { %s570_s21 = scalar_lea.vmem %s569_s11, 256  ;;  %p571_p2 = scmp.lt.s32.totalorder %s770_s22, %s569_s11 }
  0x35   : > { %p566_p6 = pnand %p564_p1, %p552_p7  ;;  %p572_p3 = scmp.lt.s32.totalorder %s570_s21, %s563_s7 }
  0x37   : > { %p567_p5 = pneg %p566_p6  ;;  %p573_p4 = por %p572_p3, %p571_p2 }
  0x39   : > { %p574_p8 = pnand %p573_p4, %p567_p5 }
  0x3b   : > { %577 = shalt.err (!%p574_p8)
}
  0x3c   : > { %471 = dma.hbm_to_vmem [thread:$0]  (!%p766_p11), %s764_s17, 128, %s770_s22, %s772_s25, %s649_s28, %s649_s28, %s650_s29  }
  0x3d   : > { %p878_p1 = scmp.ne.s32.totalorder %s873_s20, 0 }
  0x3e   : > { %s799_s26 = sand.u32 (!%p878_p1), 1, %s638_s13   ;;  %p879_p4 = scmp.ne.s32.totalorder (!%p878_p1), %s871_s18, 0 }
  0x3f   : > { %171 = sbr.rel (%p878_p1) target bundleno = 304 (0x130), region = 32  ;;  %s413_s27 = sshll.u32 (!%p878_p1), %s799_s26, 3 }
  0x40   : > { %s174_s30 = scalar_lea.sflag (!%p878_p1), [#allocation3], %s799_s26  ;;  %s177_s4 = scalar_lea.vmem (!%p878_p1), [#allocation2], %s413_s27 }
  0x44   : > { %621 = dma.done.wait (%p879_p4), %s174_s30, 128  }
  0x45   : > { %623 = vsyncadd (%p879_p4), %s174_s30, 4294967168  ;;  %p880_p6 = scmp.eq.s32.totalorder %s698_s16, 0 }
  0x47   : > { %625 = dma.done.wait (%p880_p6), [#allocation6], 512   ;;  %p881_p8 = pmov %p880_p6 }
  0x48   : > { %v652_v0 = vmov 0.0   ;;  %vm653_vm0 = vmmov 0   ;;  %v519_v1 = vld [vmem:[#allocation5 + $0x18] sm:$0xff]   ;;  %v520_v2 = vld [vmem:[#allocation5 + $0x10] sm:$0xff]   ;;  %v521_v3 = vld [vmem:[#allocation5 + $0x8] sm:$0xff]   ;;  %vm253_vm1 = vcmask 523264  }
  0x49   : > { %627 = vsyncadd (%p881_p8), [#allocation6], 4294966784  ;;  %444 = vmatprep.subr.bf16.mxu0 %v652_v0  ;;  %452 = vmatprep.mubr.msk.bf16.mxu0 %vm653_vm0, %v652_v0  ;;  %v522_v4 = vld [vmem:[#allocation5] sm:$0xff]   ;;  %v523_v5 = vld [vmem:[%s177_s4] sm:$0xff]   ;;  %s203_s28 = scalar_lea.vmem [#allocation7], %s413_s27  ;;  %s433_s17 = sshll.u32 %s698_s16, 7 }
  0x4a   : > { %445 = vmatpush3.bf16.msra.mxu0 %v519_v1  ;;  %v416_v7 = vld [vmem:[%s865_s2] ss:$0 sm:$0xff]  ;;  %s322_s29 = sshll.u32 %s203_s28, 4  ;;  %s820_s25 = scalar_lea.hbm %s866_s3, %s433_s17  ;;  %s815_s29 = int_to_ptr.vmem [resolvable:$true] %s322_s29 }
  0x4b   : > { %446 = vmatprep.subr.bf16.mxu0 %v652_v0  ;;  %s309_s8 = scalar_lea.sflag [#allocation4], %s799_s26  ;;  %s578_s9 = scalar_lea.vmem %s815_s29, 128 }
  0x4c   : > { %p579_p3 = scmp.ne.s32.totalorder %s815_s29, %s578_s9  ;;  %p882_p11 = scmp.ne.s32.totalorder %s876_s6, 0 }
  0x4d   : > { %s654_s16 = smov [#allocation7]  }
  0x4e   : > { %447 = vmatpush3.bf16.msra.mxu0 %v520_v2  ;;  %p580_p7 = pnand %p579_p3, %p882_p11  ;;  %s582_s7 = sshll.u32 %s654_s16, 4  ;;  %s583_s7 = int_to_ptr.vmem [resolvable:$false] %s582_s7 }
  0x4f   : > { %448 = vmatprep.subr.bf16.mxu0 %v652_v0  ;;  %s584_s10 = scalar_lea.vmem %s583_s7, 256  ;;  %p585_p10 = scmp.lt.s32.totalorder %s815_s29, %s583_s7 }
  0x50   : > { %p581_p9 = pneg %p580_p7  ;;  %p586_p12 = scmp.lt.s32.totalorder %s584_s10, %s578_s9 }
  0x52   : > { %449 = vmatpush3.bf16.msra.mxu0 %v521_v3  ;;  %p587_p13 = por %p586_p12, %p585_p10 }
  0x53   : > { %450 = vmatprep.subr.bf16.mxu0 %v652_v0 }
  0x54   : > { %p588_p0 = pnand %p587_p13, %p581_p9 }
  0x56   : > { %451 = vmatpush3.bf16.msra.mxu0 %v522_v4 }
  0x59   : > { %453 = vmatmul.mubr.msk.bf16.vlgmr.msra.gmra.mxu0 %vm253_vm1, %v523_v5 }
 0x119   : > { %v291_v6 = vpop.f32.mrf.mxu0 }
 0x11a   : > { %v292_v10 = vadd.f32 %v416_v7, %v291_v6 }
 0x11b   : > { %v454_v8 = vpop.f32.mrf.mxu0 }
 0x11d   : > { %v294_v9 = vpop.f32.mrf.mxu0 }
 0x11e   : > { %v295_v11 = vadd.f32 %v416_v7, %v294_v9 }
 0x11f   : > { %v455_v12 = vpop.f32.mrf.mxu0 }
 0x120   : > { %v437_v13 = vpack.c.bf16 %v295_v11, %v292_v10 }
 0x122   : > { %438 = vst [vmem:[%s203_s28] sm:$0xff] %v437_v13  }
 0x123   : > { %591 = shalt.err (!%p588_p0)
}
 0x124   : > { %s592_s11 = scalar_lea.hbm %s820_s25, 128  ;;  %s596_s30 = scalar_lea.hbm %s866_s3, 256 }
 0x125   : > { %p593_p5 = scmp.ne.s32.totalorder %s820_s25, %s592_s11  ;;  %p597_p4 = scmp.lt.s32.totalorder %s820_s25, %s866_s3 }
 0x126   : > { %p598_p6 = scmp.lt.s32.totalorder %s596_s30, %s592_s11 }
 0x127   : > { %p594_p2 = pnand %p593_p5, %p882_p11 }
 0x128   : > { %p599_p8 = por %p598_p6, %p597_p4 }
 0x129   : > { %p595_p1 = pneg %p594_p2 }
 0x12b   : > { %p600_p3 = pnand %p599_p8, %p595_p1 }
 0x12d   : > { %603 = shalt.err (!%p600_p3)
}
 0x12e   : > { %s655_s20 = smov 64   ;;  %s656_s28 = smov 4  }
 0x12f   : > { %462 = dma.vmem_to_hbm [thread:$0]  (%p882_p11), %s815_s29, 128, %s820_s25, %s309_s8, %s655_s20, %s655_s20, %s656_s28  }
 0x130 PF: > { %s337_s17 = sand.u32 1, %s634_s12   ;;  %p883_p7 = scmp.ne.s32.totalorder %s872_s19, 0 }
 0x131   : > { %p884_p9 = scmp.ge.s32.totalorder %s646_s15, 2  ;;  %s338_s22 = scalar_lea.sflag [#allocation4], %s337_s17 }
 0x133   : > { %p473_p10 = pnand %p884_p9, %p883_p7 }
 0x135   : > { %p474_p12 = pneg %p473_p10 }
 0x137   : > { %629 = dma.done.wait (%p474_p12), %s338_s22, 128  }
 0x138   : > { %631 = vsyncadd (%p474_p12), %s338_s22, 4294967168  ;;  %p17_p13 = scmp.ge.s32.totalorder %s731_s24, 4   ;;  %s885_s12 = smov %s638_s13 }
 0x139   : > { %s886_s13 = smov %s642_s14  ;;  %s887_s14 = smov %s751_s5 }
 0x13a   : > { %s888_s15 = smov %s731_s24  ;;  %19 = sbr.rel (!%p17_p13) target bundleno = 6 (0x6), region = 81 }
 0x13f   :  { %343 = vsyncpa [#allocation3], 1 }
 0x140   :  { %345 = vsyncpa [#allocation3 + $0x1], 1 }
 0x141   :  { %346 = vsyncpa [#allocation6], 1 }
 0x142   :  { %347 = vsyncpa [#allocation4], 1 }
 0x143   :  { %349 = vsyncpa [#allocation4 + $0x1], 1 }

</bundles_post_ra>
